<compile_context>
chip_gen: v5e
topology: v5e:2x2
jax: 0.10.0
libtpu: 0.0.40
codegen_flags: <defaults>
</compile_context>

<pallas_src>
import math

import jax
import jax.numpy as jnp
from jax.experimental import pallas as pl
from jax.experimental.pallas import tpu as pltpu


def _round_up(x, m):
    return (x + m - 1) // m * m


def _cdiv(a, b):
    return -(-a // b)


def _vmem_capacity_bytes():
    """Physical VMEM of the local TPU, with a conservative (v7x) fallback."""
    try:
        info = pltpu.get_tpu_info()
        cap = int(getattr(info, "vmem_capacity_bytes", 0) or 0)
        if cap > 0:
            return cap
    except Exception:
        pass
    return 64 * 1024 * 1024


def _make_ffn_kernel(single_h_step, acc_is_out, approximate_gelu):
    def kernel(x_ref, w1a_ref, w1g_ref, b1_ref, w2_ref, b2_ref, o_ref, *scratch):
        # x_ref:   (TM, dim)
        # w1a_ref: (dim, TH)   w1g_ref: (dim, TH)   b1_ref: (2, TH)
        # w2_ref:  (TH, dim)   b2_ref:  (1, dim)
        # o_ref:   (TM, dim)   scratch: optional f32 (TM, dim) accumulator
        x = x_ref[...]

        # First linear, split into the two GEGLU halves (native-dtype MXU
        # matmuls, f32 accumulation).
        a = jnp.dot(x, w1a_ref[...], preferred_element_type=jnp.float32)
        a = a + b1_ref[0:1, :].astype(jnp.float32)
        g = jnp.dot(x, w1g_ref[...], preferred_element_type=jnp.float32)
        g = g + b1_ref[1:2, :].astype(jnp.float32)

        if approximate_gelu:
            # tanh form -> EUP slot (free when MXU-bound).
            c = jnp.float32(math.sqrt(2.0 / math.pi))
            gelu_g = 0.5 * g * (1.0 + jnp.tanh(c * (g + 0.044715 * g * g * g)))
        else:
            # Exact erf, matches torch F.gelu default.
            inv_sqrt2 = jnp.float32(1.0 / math.sqrt(2.0))
            gelu_g = 0.5 * g * (1.0 + jax.lax.erf(g * inv_sqrt2))

        act = (a * gelu_g).astype(w2_ref.dtype)
        partial = jnp.dot(act, w2_ref[...], preferred_element_type=jnp.float32)
        b2 = b2_ref[...].astype(jnp.float32)

        if single_h_step:
            # Weights resident, one reduction step: no accumulator needed.
            o_ref[...] = (partial + b2).astype(o_ref.dtype)
        else:
            acc_ref = o_ref if acc_is_out else scratch[0]
            h_idx = pl.program_id(1)

            @pl.when(h_idx == 0)
            def _init():
                acc_ref[...] = jnp.zeros_like(acc_ref)

            acc_ref[...] += partial

            @pl.when(h_idx == pl.num_programs(1) - 1)
            def _finalize():
                o_ref[...] = (acc_ref[...] + b2).astype(o_ref.dtype)

    return kernel


def ffn_pallas(x, w1, b1, w2, b2, *, tile_m=512, tile_h=1024,
               approximate_gelu=False):
    """FFN forward: GEGLU MLP.

    x:  (M, dim)
    w1: (dim, 2*hidden), b1: (2*hidden,)
    w2: (hidden, dim),   b2: (dim,)
    Returns (M, dim) in the weights' dtype.
    """
    M, dim = x.shape
    hidden = w2.shape[0]
    assert w1.shape == (dim, 2 * hidden)
    assert b1.shape == (2 * hidden,)
    assert w2.shape == (hidden, dim)
    assert b2.shape == (dim,)

    # Uniform compute dtype: feed x at the weights' dtype so bf16 weights run
    # the MXU at native rate. Accumulation / bias / GEGLU stay f32.
    if x.dtype != w1.dtype:
        x = x.astype(w1.dtype)
    compute_dtype = x.dtype
    out_dtype = compute_dtype
    c_isz = jnp.dtype(compute_dtype).itemsize
    w_isz = jnp.dtype(w1.dtype).itemsize

    LANE = 128
    sub = {4: 8, 2: 16, 1: 32}.get(c_isz, 8)   # packed sublane multiple

    # ---- M tiling -----------------------------------------------------------
    tile_m = max(sub, _round_up(min(tile_m, _round_up(M, sub)), sub))
    if _cdiv(M, tile_m) < 2:
        # Guarantee >= 2 parallel M steps when M allows (v7x megacore).
        half = _round_up(_cdiv(M, 2), sub)
        if sub <= half < tile_m:
            tile_m = half
    m_pad = _round_up(M, tile_m)
    n_m = m_pad // tile_m

    # ---- hidden tiling / weight residency -----------------------------------
    h_aligned = _round_up(hidden, LANE)

    def vmem_est(tm, th, multi_h):
        xo = 2 * 2 * tm * dim * c_isz                 # x + o tiles, 2-deep
        w = 2 * 3 * dim * th * w_isz                  # w1_a, w1_g, w2, 2-deep
        b = 2 * (2 * th + dim) * w_isz                # bias tiles
        inter = 4 * tm * th * 4                       # f32 a / g / gelu / act
        acc = tm * dim * 4 if (multi_h and out_dtype != jnp.float32) else 0
        return xo + w + b + inter + acc

    budget = int(_vmem_capacity_bytes() * 0.8)

    if vmem_est(tile_m, h_aligned, False) <= budget:
        tile_h = h_aligned                            # weights fully resident
    else:
        tile_h = max(LANE, _round_up(min(tile_h, h_aligned), LANE))
        while tile_h > LANE and vmem_est(tile_m, tile_h, True) > budget:
            tile_h = max(LANE, _round_up(tile_h // 2, LANE))
    hidden_pad = _round_up(hidden, tile_h)
    n_h = hidden_pad // tile_h
    single_h = (n_h == 1)

    # ---- padding -------------------------------------------------------------
    if m_pad != M:
        x = jnp.pad(x, ((0, m_pad - M), (0, 0)))

    w1_a = w1[:, :hidden]
    w1_g = w1[:, hidden:]
    b1_a = b1[:hidden]
    b1_g = b1[hidden:]
    if hidden_pad != hidden:
        ph = hidden_pad - hidden
        w1_a = jnp.pad(w1_a, ((0, 0), (0, ph)))       # zero cols -> act = 0
        w1_g = jnp.pad(w1_g, ((0, 0), (0, ph)))
        b1_a = jnp.pad(b1_a, (0, ph))
        b1_g = jnp.pad(b1_g, (0, ph))
        w2 = jnp.pad(w2, ((0, ph), (0, 0)))           # zero rows -> no contrib
    b1_2 = jnp.stack([b1_a, b1_g], axis=0)            # (2, hidden_pad)
    b2_2d = b2.reshape(1, dim)

    # ---- accumulator strategy -------------------------------------------------
    acc_is_out = (out_dtype == jnp.float32)
    need_scratch = (not single_h) and (not acc_is_out)
    scratch_shapes = [pltpu.VMEM((tile_m, dim), jnp.float32)] if need_scratch else []

    est = vmem_est(tile_m, tile_h, not single_h)
    vmem_limit = int(min(max(est * 1.5, 32 * 1024 * 1024), budget))

    weight_bytes = ((w1_a.size + w1_g.size + w2.size) * w_isz
                    + (b1_2.size + b2.size) * w_isz)
    weight_passes = 1 if single_h else n_m            # refetch per M tile if tiled
    cost = pl.CostEstimate(
        flops=int(6 * m_pad * dim * hidden_pad),
        transcendentals=int(m_pad * hidden_pad),
        bytes_accessed=int(2 * m_pad * dim * c_isz + weight_bytes * weight_passes),
    )

    kernel = _make_ffn_kernel(single_h, acc_is_out, approximate_gelu)

    out = pl.pallas_call(
        kernel,
        out_shape=jax.ShapeDtypeStruct((m_pad, dim), out_dtype),
        grid_spec=pltpu.PrefetchScalarGridSpec(
            num_scalar_prefetch=0,
            grid=(n_m, n_h),
            in_specs=[
                pl.BlockSpec((tile_m, dim), lambda i, h: (i, 0)),   # x
                pl.BlockSpec((dim, tile_h), lambda i, h: (0, h)),   # w1_a
                pl.BlockSpec((dim, tile_h), lambda i, h: (0, h)),   # w1_g
                pl.BlockSpec((2, tile_h), lambda i, h: (0, h)),     # b1 (a, g)
                pl.BlockSpec((tile_h, dim), lambda i, h: (h, 0)),   # w2
                pl.BlockSpec((1, dim), lambda i, h: (0, 0)),        # b2 (resident)
            ],
            out_specs=pl.BlockSpec((tile_m, dim), lambda i, h: (i, 0)),
            scratch_shapes=scratch_shapes,
        ),
        compiler_params=pltpu.CompilerParams(
            dimension_semantics=("parallel", "arbitrary"),
            vmem_limit_bytes=vmem_limit,
        ),
        cost_estimate=cost,
    )(x, w1_a, w1_g, b1_2, w2, b2_2d)

    if m_pad != M:
        out = out[:M]
    return out
    # TODO(synk): for extremely large `dim` a third grid axis over dim (K of
    # matmul 1 / N of matmul 2) would be needed; `dim` is kept resident here.


def ffn_reference(x, w1, b1, w2, b2):
    h = x @ w1 + b1
    hidden = w2.shape[0]
    a, g = h[:, :hidden], h[:, hidden:]
    act = a * jax.nn.gelu(g, approximate=False)       # torch F.gelu default
    return act @ w2 + b2


if __name__ == "__main__":
    # Small shapes consistent with the module: dim=32, multi=4.
    batch, seq, dim, multi = 2, 8, 32, 4
    hidden = dim * multi

    key = jax.random.PRNGKey(0)
    k_x, k_w1, k_b1, k_w2, k_b2 = jax.random.split(key, 5)

    bound1 = 1.0 / math.sqrt(dim)
    bound2 = 1.0 / math.sqrt(hidden)
    w1 = jax.random.uniform(k_w1, (dim, 2 * hidden), jnp.float32, -bound1, bound1)
    b1 = jax.random.uniform(k_b1, (2 * hidden,), jnp.float32, -bound1, bound1)
    w2 = jax.random.uniform(k_w2, (hidden, dim), jnp.float32, -bound2, bound2)
    b2 = jax.random.uniform(k_b2, (dim,), jnp.float32, -bound2, bound2)

    x = jax.random.normal(k_x, (batch, seq, dim), jnp.float32)
    x2d = x.reshape(batch * seq, dim)

    out2d = ffn_pallas(x2d, w1, b1, w2, b2)
    out = out2d.reshape(batch, seq, dim)
    jax.block_until_ready(out)

    ref = ffn_reference(x2d, w1, b1, w2, b2).reshape(batch, seq, dim)
    assert jnp.allclose(out, ref, atol=2e-5, rtol=2e-5), "mismatch vs reference"

    print("KERNEL_OK")
</pallas_src>

<mosaic_0001>
module attributes {stable_mosaic.version = 11 : i64} {
  func.func @kernel(%arg0: i32, %arg1: i32, %arg2: memref<8x32xf32, #tpu.memory_space<vmem>>, %arg3: memref<32x128xf32, #tpu.memory_space<vmem>>, %arg4: memref<32x128xf32, #tpu.memory_space<vmem>>, %arg5: memref<2x128xf32, #tpu.memory_space<vmem>>, %arg6: memref<128x32xf32, #tpu.memory_space<vmem>>, %arg7: memref<1x32xf32, #tpu.memory_space<vmem>>, %arg8: memref<8x32xf32, #tpu.memory_space<vmem>>) attributes {dimension_semantics = [#tpu.dimension_semantics<parallel>, #tpu.dimension_semantics<arbitrary>], iteration_bounds = array<i64: 2, 1>, scalar_prefetch = 0 : i64, scratch_operands = 0 : i64, tpu.core_type = #tpu.core_type<tc>, window_params = [{transform_indices = @transform_0, window_bounds = array<i64: 8, 32>}, {transform_indices = @transform_1, window_bounds = array<i64: 32, 128>}, {transform_indices = @transform_2, window_bounds = array<i64: 32, 128>}, {transform_indices = @transform_3, window_bounds = array<i64: 2, 128>}, {transform_indices = @transform_4, window_bounds = array<i64: 128, 32>}, {pipeline_mode = #tpu.pipeline_mode<synchronous>, transform_indices = @transform_5, window_bounds = array<i64: 1, 32>}, {transform_indices = @transform_6, window_bounds = array<i64: 8, 32>}]} {
    %c0 = arith.constant 0 : index
    %c0_0 = arith.constant 0 : index
    %0 = vector.load %arg2[%c0, %c0_0] : memref<8x32xf32, #tpu.memory_space<vmem>>, vector<8x32xf32>
    %c0_1 = arith.constant 0 : index
    %c0_2 = arith.constant 0 : index
    %1 = vector.load %arg3[%c0_1, %c0_2] : memref<32x128xf32, #tpu.memory_space<vmem>>, vector<32x128xf32>
    %cst = arith.constant dense<0.000000e+00> : vector<8x128xf32>
    %2 = tpu.matmul %0, %1, %cst {dimension_numbers = #tpu.dot_dimension_numbers<[1], [0], [0], [1], [0, 0, 1, 1], [], []>} : vector<8x32xf32>, vector<32x128xf32>, vector<8x128xf32> -> vector<8x128xf32>
    %c0_3 = arith.constant 0 : index
    %c0_4 = arith.constant 0 : index
    %3 = vector.load %arg5[%c0_3, %c0_4] : memref<2x128xf32, #tpu.memory_space<vmem>>, vector<1x128xf32>
    %4 = vector.broadcast %3 : vector<1x128xf32> to vector<8x128xf32>
    %5 = arith.addf %2, %4 : vector<8x128xf32>
    %c0_5 = arith.constant 0 : index
    %c0_6 = arith.constant 0 : index
    %6 = vector.load %arg4[%c0_5, %c0_6] : memref<32x128xf32, #tpu.memory_space<vmem>>, vector<32x128xf32>
    %cst_7 = arith.constant dense<0.000000e+00> : vector<8x128xf32>
    %7 = tpu.matmul %0, %6, %cst_7 {dimension_numbers = #tpu.dot_dimension_numbers<[1], [0], [0], [1], [0, 0, 1, 1], [], []>} : vector<8x32xf32>, vector<32x128xf32>, vector<8x128xf32> -> vector<8x128xf32>
    %c1 = arith.constant 1 : index
    %c0_8 = arith.constant 0 : index
    %8 = vector.load %arg5[%c1, %c0_8] : memref<2x128xf32, #tpu.memory_space<vmem>>, vector<1x128xf32>
    %9 = vector.broadcast %8 : vector<1x128xf32> to vector<8x128xf32>
    %10 = arith.addf %7, %9 : vector<8x128xf32>
    %cst_9 = arith.constant 5.000000e-01 : f32
    %11 = vector.broadcast %cst_9 : f32 to vector<8x128xf32>
    %12 = arith.mulf %11, %10 : vector<8x128xf32>
    %cst_10 = arith.constant 0.707106769 : f32
    %13 = vector.broadcast %cst_10 : f32 to vector<8x128xf32>
    %14 = arith.mulf %10, %13 : vector<8x128xf32>
    %15 = math.erf %14 : vector<8x128xf32>
    %cst_11 = arith.constant 1.000000e+00 : f32
    %16 = vector.broadcast %cst_11 : f32 to vector<8x128xf32>
    %17 = arith.addf %16, %15 : vector<8x128xf32>
    %18 = arith.mulf %12, %17 : vector<8x128xf32>
    %19 = arith.mulf %5, %18 : vector<8x128xf32>
    %c0_12 = arith.constant 0 : index
    %c0_13 = arith.constant 0 : index
    %20 = vector.load %arg6[%c0_12, %c0_13] : memref<128x32xf32, #tpu.memory_space<vmem>>, vector<128x32xf32>
    %cst_14 = arith.constant dense<0.000000e+00> : vector<8x32xf32>
    %21 = tpu.matmul %19, %20, %cst_14 {dimension_numbers = #tpu.dot_dimension_numbers<[1], [0], [0], [1], [0, 0, 1, 1], [], []>} : vector<8x128xf32>, vector<128x32xf32>, vector<8x32xf32> -> vector<8x32xf32>
    %c0_15 = arith.constant 0 : index
    %c0_16 = arith.constant 0 : index
    %22 = vector.load %arg7[%c0_15, %c0_16] : memref<1x32xf32, #tpu.memory_space<vmem>>, vector<1x32xf32>
    %23 = vector.broadcast %22 : vector<1x32xf32> to vector<8x32xf32>
    %24 = arith.addf %21, %23 : vector<8x32xf32>
    %c0_17 = arith.constant 0 : index
    %c0_18 = arith.constant 0 : index
    %25 = vector.load %arg8[%c0_17, %c0_18] : memref<8x32xf32, #tpu.memory_space<vmem>>, vector<8x32xf32>
    tpu.vector_store %arg8[%c0_17, %c0_18], %24 {strides = array<i32>} : memref<8x32xf32, #tpu.memory_space<vmem>>, vector<8x32xf32>,
    return
  }
  func.func @transform_0(%arg0: i32, %arg1: i32) -> (i32, i32) {
    %c0_i32 = arith.constant 0 : i32
    %c0_i32_0 = arith.constant 0 : i32
    return %arg0, %c0_i32 : i32, i32
  }
  func.func @transform_1(%arg0: i32, %arg1: i32) -> (i32, i32) {
    %c0_i32 = arith.constant 0 : i32
    %c0_i32_0 = arith.constant 0 : i32
    return %c0_i32, %arg1 : i32, i32
  }
  func.func @transform_2(%arg0: i32, %arg1: i32) -> (i32, i32) {
    %c0_i32 = arith.constant 0 : i32
    %c0_i32_0 = arith.constant 0 : i32
    return %c0_i32, %arg1 : i32, i32
  }
  func.func @transform_3(%arg0: i32, %arg1: i32) -> (i32, i32) {
    %c0_i32 = arith.constant 0 : i32
    %c0_i32_0 = arith.constant 0 : i32
    return %c0_i32, %arg1 : i32, i32
  }
  func.func @transform_4(%arg0: i32, %arg1: i32) -> (i32, i32) {
    %c0_i32 = arith.constant 0 : i32
    %c0_i32_0 = arith.constant 0 : i32
    return %arg1, %c0_i32 : i32, i32
  }
  func.func @transform_5(%arg0: i32, %arg1: i32) -> (i32, i32) {
    %c0_i32 = arith.constant 0 : i32
    %c0_i32_0 = arith.constant 0 : i32
    %c0_i32_1 = arith.constant 0 : i32
    return %c0_i32, %c0_i32_0 : i32, i32
  }
  func.func @transform_6(%arg0: i32, %arg1: i32) -> (i32, i32) {
    %c0_i32 = arith.constant 0 : i32
    %c0_i32_0 = arith.constant 0 : i32
    return %arg0, %c0_i32 : i32, i32
  }
}

</mosaic_0001>

<bundles_post_ra>
// kernel: tpu_custom_call.1
= control target key start
LH: loop header
LB: loop body
LE: loop exit
PB: predicated region body
PF: predicated region fallthrough
CT: control target
= control target key end

     0   :  { %11 = vsyncpa [#allocation3], 0  ;;  %s996_s0 = inlined_call_operand.vmem [shape: f32[16,32], index: 0, kind: input, shape index: {}]   ;;  %s997_s1 = inlined_call_operand.vmem [shape: f32[32,128], index: 1, kind: input, shape index: {}]   ;;  %s998_s2 = inlined_call_operand.vmem [shape: f32[32,128], index: 2, kind: input, shape index: {}]   ;;  %s999_s3 = inlined_call_operand.vmem [shape: f32[2,128], index: 3, kind: input, shape index: {}]   ;;  %s1000_s4 = inlined_call_operand.vmem [shape: f32[128,32], index: 4, kind: input, shape index: {}]   ;;  %s1001_s5 = inlined_call_operand.vmem [shape: f32[1,32], index: 5, kind: input, shape index: {}]   ;;  %s1002_s6 = inlined_call_operand.hbm [shape: f32[16,32], index: 6, kind: output, shape index: {}]  }
   0x1   :  { %13 = vsyncpa [#allocation3 + $0x1], 0  ;;  %s811_s21 = smov 0   ;;  %s813_s22 = smov 0  }
   0x2   :  { %s815_s23 = smov 0   ;;  %s817_s24 = smov 0  }
   0x3   :  { %s819_s25 = smov 0   ;;  %s821_s26 = smov 0  }
   0x4 LB: > { %s618_s27 = sadd.s32 4294967295, %s774_s26   ;;  %s619_s28 = sadd.s32 4294967294, %s774_s26   ;;  %s774_s26 = sphi %s821_s26, %s19_s26   ;;  %s770_s25 = sphi %s819_s25, %s1009_s25   ;;  %s766_s24 = sphi %s817_s24, %s1008_s24   ;;  %s762_s23 = sphi %s815_s23, %s1007_s23   ;;  %s758_s22 = sphi %s813_s22, %s1006_s22   ;;  %s754_s21 = sphi %s811_s21, %s1005_s21  }
   0x5   : > { %s31_s29 = sadd.s32 1, %s770_s25  ;;  %s189_s30 = sadd.s32 1, %s762_s23 }
   0x6   : > { %p33_p0 = scmp.ge.s32.totalorder %s31_s29, 2  ;;  %p199_p1 = scmp.ne.s32.totalorder %s762_s23, %s758_s22 }
   0x7   : > { %p200_p2 = scmp.eq.s32.totalorder %s618_s27, 1  ;;  %p205_p3 = scmp.ne.s32.totalorder %s758_s22, %s754_s21 }
   0x8   : > { %s1011_s29 = smov (%p33_p0, %s31_s29), 0  ;;  %p206_p5 = scmp.eq.s32.totalorder %s619_s28, 1 }
   0x9   : > { %p851_p4 = por %p200_p2, %p199_p1  ;;  %s186_s8 = ssub.s32 %s770_s25, %s1011_s29 }
   0xa   : > { %p626_p6 = scmp.ge.s32.totalorder %s774_s26, 1  ;;  %p187_p7 = scmp.eq.s32.totalorder %s186_s8, 0 }
   0xb   : > { %p858_p8 = por %p206_p5, %p205_p3  ;;  %p264_p9 = scmp.lt.s32.totalorder %s774_s26, 3 }
   0xc   : > { %s864_s10 = scalar_select %p187_p7, %s762_s23, %s189_s30  }
   0xd   : > { %p265_p10 = pnand %p626_p6, %p264_p9 }
   0xe   : > { %p310_p11 = scmp.lt.s32.totalorder (!%p265_p10), %s766_s24, 1  ;;  %s633_s14 = sshll.u32 (!%p265_p10), %s766_s24, 3 }
   0xf   : > { %268 = sbr.rel (%p265_p10) target bundleno = 346 (0x15a), region = 44  ;;  %s486_s17 = scalar_lea.hbm (!%p265_p10), %s1002_s6, %s633_s14 }
  0x10   : > { %s490_s28 = sshll.u32 (!%p265_p10), %s486_s17, 4  ;;  %s491_s28 = int_to_ptr.hbm [resolvable:$true] %s490_s28 }
  0x14   : > { %v366_v0 = vld [vmem:[%s998_s2 + $0x18] sm:$0xff]  ;;  %v365_v1 = vld [vmem:[%s998_s2 + $0x10] sm:$0xff]  ;;  %v364_v4 = vld [vmem:[%s998_s2 + $0x8] sm:$0xff]  ;;  %s311_s27 = scalar_select %p310_p11, %s766_s24, 1  ;;  %vm339_vm0 = vcmask 261120  }
  0x15   : > { %381 = vmatpush.msra.mxu1 %v366_v0  ;;  %v336_v2 = vld [vmem:[%s997_s1 + $0x18] sm:$0xff]  ;;  %v335_v3 = vld [vmem:[%s997_s1 + $0x10] sm:$0xff]  ;;  %v334_v5 = vld [vmem:[%s997_s1 + $0x8] sm:$0xff]  ;;  %s710_s24 = sshra.s32 %s491_s28, 4  ;;  %s711_s24 = int_to_ptr.hbm [resolvable:$true] %s710_s24 }
  0x16   : > { %355 = vmatpush.msra.mxu0 %v336_v2  ;;  %v363_v6 = vld [vmem:[%s998_s2] sm:$0xff]  ;;  %s628_s12 = sshll.u32 %s311_s27, 3  ;;  %v449_v9 = vld [vmem:[%s1000_s4 + $0x78] sm:$0xff]  ;;  %v448_v10 = vld [vmem:[%s1000_s4 + $0x70] sm:$0xff]  ;;  %s712_s8 = scalar_lea.hbm %s711_s24, 8 }
  0x17   : > { %382 = vmatpush.msra.mxu1 %v365_v1  ;;  %s313_s15 = scalar_lea.vmem %s996_s0, %s628_s12  ;;  %v333_v7 = vld [vmem:[%s997_s1] sm:$0xff]  ;;  %454 = vmatpush.msra.mxu2 %v449_v9  ;;  %v447_v11 = vld [vmem:[%s1000_s4 + $0x68] sm:$0xff]  ;;  %v445_v14 = vld [vmem:[%s1000_s4 + $0x58] sm:$0xff]  ;;  %s307_s12 = sand.u32 1, %s758_s22  }
  0x18   : > { %356 = vmatpush.msra.mxu0 %v335_v3  ;;  %v332_v8 = vld [vmem:[%s313_s15] sm:$0xff]  ;;  %v444_v16 = vld [vmem:[%s1000_s4 + $0x50] sm:$0xff]  ;;  %v443_v18 = vld [vmem:[%s1000_s4 + $0x48] sm:$0xff]  ;;  %s627_s13 = sshll.u32 %s307_s12, 3  ;;  %s476_s30 = scalar_lea.sflag [#allocation3], %s307_s12 }
  0x19   : > { %383 = vmatpush.msra.mxu1 %v364_v4  ;;  %455 = vmatpush.msra.mxu2 %v448_v10  ;;  %v691_v12 = vld [vmem:[%s999_s3 + $0x1] ss:$0 sm:$0xff]  ;;  %v441_v22 = vld [vmem:[%s1000_s4 + $0x38] sm:$0xff]  ;;  %v440_v24 = vld [vmem:[%s1000_s4 + $0x30] sm:$0xff]  ;;  %s309_s20 = scalar_lea.vmem [#allocation2], %s627_s13  ;;  %p713_p12 = scmp.ne.s32.totalorder %s711_s24, %s712_s8 }
  0x1a   : > { %357 = vmatpush.msra.mxu0 %v334_v5  ;;  %v446_v13 = vld [vmem:[%s1000_s4 + $0x60] sm:$0xff]  ;;  %v439_v27 = vld [vmem:[%s1000_s4 + $0x28] sm:$0xff]  ;;  %v437_v33 = vld [vmem:[%s1000_s4 + $0x18] sm:$0xff]  ;;  %s488_s27 = sshll.u32 %s309_s20, 4  ;;  %s716_s13 = scalar_lea.hbm %s1002_s6, 16  ;;  %s489_s27 = int_to_ptr.vmem [resolvable:$true] %s488_s27 }
  0x1b   : > { %384 = vmatpush.msra.mxu1 %v363_v6  ;;  %456 = vmatpush.msra.mxu2 %v447_v11  ;;  %v442_v20 = vld [vmem:[%s1000_s4 + $0x40] sm:$0xff]  ;;  %v436_v36 = vld [vmem:[%s1000_s4 + $0x10] sm:$0xff]  ;;  %v435_v38 = vld [vmem:[%s1000_s4 + $0x8] sm:$0xff]  ;;  %p714_p13 = pnand %p713_p12, %p851_p4  ;;  %p717_p1 = scmp.lt.s32.totalorder %s711_s24, %s1002_s6 }
  0x1c   : > { %630 = vmatmul.msk.f32.vlgmr.msra.gmra.mxu1 %vm339_vm0, %v332_v8  ;;  %358 = vmatpush.msra.mxu0 %v333_v7  ;;  %v438_v30 = vld [vmem:[%s1000_s4 + $0x20] sm:$0xff]  ;;  %p718_p2 = scmp.lt.s32.totalorder %s716_s13, %s712_s8 }
  0x1d   : > { %629 = vmatmul.msk.f32.vlgmr.msra.gmra.mxu0 %vm339_vm0, %v332_v8  ;;  %457 = vmatpush.msra.mxu2 %v446_v13  ;;  %v434_v41 = vld [vmem:[%s1000_s4] sm:$0xff]  ;;  %p715_p0 = pneg %p714_p13 }
  0x1e   : > { %v692_v62 = vld [vmem:[%s999_s3] ss:$0 sm:$0xff]  ;;  %p719_p3 = por %p718_p2, %p717_p1 }
  0x1f   : > { %458 = vmatpush.msra.mxu2 %v445_v14  ;;  %v693_v7 = vld [vmem:[%s1001_s5] ss:$0 sm:$0xff] }
  0x20   : > { %p720_p5 = pnand %p719_p3, %p715_p0 }
  0x21   : > { %459 = vmatpush.msra.mxu2 %v444_v16 }
  0x23   : > { %460 = vmatpush.msra.mxu2 %v443_v18 }
  0x25   : > { %461 = vmatpush.msra.mxu2 %v442_v20 }
  0x27   : > { %462 = vmatpush.msra.mxu2 %v441_v22 }
  0x29   : > { %463 = vmatpush.msra.mxu2 %v440_v24 }
  0x2b   : > { %464 = vmatpush.msra.mxu2 %v439_v27 }
  0x2d   : > { %465 = vmatpush.msra.mxu2 %v438_v30 }
  0x2f   : > { %466 = vmatpush.msra.mxu2 %v437_v33 }
  0x31   : > { %467 = vmatpush.msra.mxu2 %v436_v36 }
  0x33   : > { %468 = vmatpush.msra.mxu2 %v435_v38 }
  0x35   : > { %469 = vmatpush.msra.mxu2 %v434_v41 }
  0x99   : > { %v386_v15 = vpop.f32.mrf.mxu1 }
  0x9a   : > { %v918_v17 = vadd.f32 %v691_v12, %v386_v15  ;;  %v360_v0 = vpop.f32.mrf.mxu0 }
  0x9b   : > { %v361_v3 = vadd.f32 %v692_v62, %v360_v0 }
  0x9c   : > { %v390_v19 = vmul.f32 0.70710677, %v918_v17  ;;  %v389_v2 = vmul.f32 0.5, %v918_v17 }
  0x9e   : > { %v391_v21 = vmul.f32 %v390_v19, %v390_v19 }
  0xa0   : > { %v392_v23 = vmin.f32 %v391_v21, 16.0 }
  0xa2   : > { %v393_v25 = vmul.f32 2.1237322e-06, %v392_v23  ;;  %v404_v26 = vmul.f32 3.8918573e-05, %v392_v23 }
  0xa4   : > { %v394_v28 = vadd.f32 0.00028619796, %v393_v25  ;;  %v405_v29 = vadd.f32 0.001143296, %v404_v26 }
  0xa6   : > { %v395_v31 = vmul.f32 %v394_v28, %v392_v23  ;;  %v406_v32 = vmul.f32 %v405_v29, %v392_v23 }
  0xa8   : > { %v407_v34 = vadd.f32 0.014752088, %v406_v32  ;;  %v396_v35 = vadd.f32 0.0036580483, %v395_v31 }
  0xaa   : > { %v408_v37 = vmul.f32 %v407_v34, %v392_v23  ;;  %v397_v40 = vmul.f32 %v396_v35, %v392_v23 }
  0xac   : > { %v409_v39 = vadd.f32 0.112945676, %v408_v37  ;;  %v398_v44 = vadd.f32 0.05243302, %v397_v40 }
  0xae   : > { %v410_v42 = vmul.f32 %v409_v39, %v392_v23  ;;  %v399_v47 = vmul.f32 %v398_v44, %v392_v23 }
  0xb0   : > { %v411_v43 = vadd.f32 0.4994258, %v410_v42  ;;  %v400_v48 = vadd.f32 0.18741608, %v399_v47 }
  0xb2   : > { %v412_v45 = vmul.f32 %v411_v43, %v392_v23  ;;  %v401_v50 = vmul.f32 %v400_v48, %v392_v23 }
  0xb4   : > { %v413_v46 = vadd.f32 1.0, %v412_v45  ;;  %v402_v54 = vadd.f32 1.1283791, %v401_v50 }
  0xb6   : > { %694 = vrcp.f32 %v413_v46  ;;  %v425_v53 = vand.u32 2147483648, %v413_v46  ;;  %v423_v56 = vand.u32 2147483647, %v413_v46  ;;  %vm419_vm2 = vweird.f32 %v413_v46 }
  0xb7   : > { %v403_v59 = vmul.f32 %v402_v54, %v390_v19 }
  0xb8   : > { %v426_v58 = vor.u32 1.1754944e-38, %v425_v53  ;;  %vm424_vm4 = vcmp.eq.f32.partialorder %v423_v56, 8.507059e+37 }
  0xbc   : > { %v695_v49 = vpop.eup %694 }
  0xbd   : > { %v415_v51 = vmul.f32 %v695_v49, %v413_v46  ;;  %vm420_vm1 = vweird.f32 %v695_v49 }
  0xbe   : > { %vm421_vm3 = vmor %vm419_vm2, %vm420_vm1 }
  0xbf   : > { %v416_v52 = vsub.f32 1.0, %v415_v51 }
  0xc1   : > { %v417_v55 = vmul.f32 %v695_v49, %v416_v52 }
  0xc3   : > { %v418_v57 = vadd.f32 %v695_v49, %v417_v55 }
  0xc5   : > { %v422_v60 = vsel %vm421_vm3, %v695_v49, %v418_v57 }
  0xc6   : > { %v427_v61 = vsel %vm424_vm4, %v426_v58, %v422_v60 }
  0xc7   : > { %v428_v63 = vmul.f32 %v427_v61, %v403_v59 }
  0xc9   : > { %v631_v1 = vclamps-f32 %v428_v63, 1.0 }
  0xcb   : > { %v431_v4 = vadd.f32 1.0, %v631_v1 }
  0xcd   : > { %v432_v5 = vmul.f32 %v431_v4, %v389_v2 }
  0xcf   : > { %v433_v6 = vmul.f32 %v432_v5, %v361_v3 }
  0xd1   : > { %470 = vmatmul.f32.vlgmr.msra.gmra.mxu2 %v433_v6 }
 0x154   : > { %v471_v8 = vpop.f32.mrf.mxu2 }
 0x155   : > { %v472_v9 = vadd.f32 %v693_v7, %v471_v8 }
 0x157   : > { %474 = vst.msk [vmem:[%s309_s20] sm:$0xff] %vm339_vm0, %v472_v9 }
 0x158   : > { %723 = shalt.err (!%p720_p5)
}
 0x159   : > { %636 = dma.vmem_to_hbm [thread:$0]  (%p851_p4), %s489_s27, 128, %s491_s28, %s476_s30  }
 0x15a PF: > { %p642_p6 = scmp.ge.s32.totalorder %s774_s26, 2  ;;  %s502_s12 = sand.u32 1, %s754_s21  }
 0x15b   : > { %s503_s17 = scalar_lea.sflag [#allocation3], %s502_s12 }
 0x15c   : > { %p639_p7 = pnand %p642_p6, %p858_p8 }
 0x15e   : > { %p640_p9 = pneg %p639_p7 }
 0x160   : > { %749 = dma.done.wait (%p640_p9), %s503_s17, 128  }
 0x161   : > { %751 = vsyncadd (%p640_p9), %s503_s17, 4294967168  ;;  %s19_s26 = sadd.s32 1, %s774_s26   ;;  %s1005_s21 = smov %s758_s22 }
 0x162   : > { %p16_p10 = scmp.ge.s32.totalorder %s19_s26, 4   ;;  %s1006_s22 = smov %s762_s23 }
 0x163   : > { %s1007_s23 = smov %s864_s10  ;;  %s1008_s24 = smov %s770_s25 }
 0x164   : > { %s1009_s25 = smov %s1011_s29  ;;  %18 = sbr.rel (!%p16_p10) target bundleno = 4 (0x4), region = 91 }
 0x169   :  { %509 = vsyncpa [#allocation3], 1 }
 0x16a   :  { %511 = vsyncpa [#allocation3 + $0x1], 1 }

</bundles_post_ra>
